<compile_context>
chip_gen: v5e
topology: v5e:2x2
jax: 0.10.0
libtpu: 0.0.40
codegen_flags: <defaults>
</compile_context>

<pallas_src>
import functools

import jax
import jax.numpy as jnp
from jax import lax
from jax.experimental import pallas as pl
from jax.experimental.pallas import tpu as pltpu


# ----------------------------------------------------------------------------
# In-kernel helpers
# ----------------------------------------------------------------------------
def _softmax_masked(energies, l_valid):
    """Row softmax over the last dim; positions >= l_valid are masked out."""
    l_pad = energies.shape[-1]
    if l_valid < l_pad:
        pos = lax.broadcasted_iota(jnp.int32, energies.shape, 1)
        energies = jnp.where(pos < l_valid, energies, -jnp.inf)
    m = jnp.max(energies, axis=-1, keepdims=True)
    p = jnp.exp(energies - m)
    s = jnp.sum(p, axis=-1, keepdims=True)
    return p * pl.reciprocal(s, approx=False)


# ----------------------------------------------------------------------------
# Kernels (e_t is the transposed encoder output, laid out (H, Lp))
# ----------------------------------------------------------------------------
def _dot_kernel(l_valid, h_ref, et_ref, o_ref):
    # energy_i = h . e_i  ==  h @ e_t
    energies = jnp.dot(h_ref[...], et_ref[...],
                       preferred_element_type=jnp.float32)          # (1, Lp)
    o_ref[...] = _softmax_masked(energies, l_valid)


def _general_kernel(l_valid, h_ref, et_ref, w_ref, b_ref, o_ref):
    h = h_ref[...]                                                   # (1, H)
    # q = h @ W  (one small HxH matmul, no transpose)
    q = jnp.dot(h, w_ref[...], preferred_element_type=jnp.float32)  # (1, H)
    # h.b in f32 regardless of input dtype
    c = jnp.sum(h.astype(jnp.float32) * b_ref[...].astype(jnp.float32),
                axis=-1, keepdims=True)                              # (1, 1)
    # energy_i = q . e_i + h.b
    energies = jnp.dot(q, et_ref[...],
                       preferred_element_type=jnp.float32) + c      # (1, Lp)
    o_ref[...] = _softmax_masked(energies, l_valid)


def _concat_kernel(l_valid, h_ref, et_ref, qe_ref, qh_ref, vb_ref, o_ref):
    # q_e = v@W_e, q_h = v@W_h, vb = v.b were precomputed in the wrapper.
    h32 = h_ref[...].astype(jnp.float32)                             # (1, H)
    c = (jnp.sum(qh_ref[...] * h32, axis=-1, keepdims=True)
         + vb_ref[...])                                              # (1, 1)
    # energy_i = q_e . e_i + (v@W_h).h + v.b
    energies = jnp.dot(qe_ref[...], et_ref[...],
                       preferred_element_type=jnp.float32) + c      # (1, Lp)
    o_ref[...] = _softmax_masked(energies, l_valid)


# ----------------------------------------------------------------------------
# Host-side preparation (done once per model / once per sequence)
# ----------------------------------------------------------------------------
def prepare_params(method, params):
    """Parameter-only precompute; call once at parameter-preparation time."""
    if method == 'dot':
        return {}
    if method == 'general':
        return {'w': params['w'], 'b': params['b'].reshape(1, -1)}
    if method == 'concat':
        w = params['w'].astype(jnp.float32)                # (H, 2H)
        hidden = w.shape[0]
        v = params['v'].reshape(1, -1).astype(jnp.float32)  # (1, H)
        b = params['b'].reshape(-1, 1).astype(jnp.float32)  # (H, 1)
        return {
            'q_h': v @ w[:, :hidden],                      # (1, H)
            'q_e': v @ w[:, hidden:],                      # (1, H)
            'vb': v @ b,                                   # (1, 1)
        }
    raise ValueError(method)


def prepare_encoder(encoder_output):
    """Transpose + lane-pad the encoder output once per sequence.

    encoder_output: (1, L, H) -> e_t: (H, Lp) with Lp a multiple of 128.
    """
    e = encoder_output[0]                                  # (L, H)
    max_len = e.shape[0]
    l_pad = 128 * pl.cdiv(max_len, 128)
    e_t = jnp.swapaxes(e, 0, 1)                            # (H, L), L lane-dense
    if l_pad != max_len:
        e_t = jnp.pad(e_t, ((0, 0), (0, l_pad - max_len)))
    return e_t, max_len


# ----------------------------------------------------------------------------
# Per-decode-step pallas_call
# ----------------------------------------------------------------------------
def attn_step(method, hidden_state, e_t, max_len, prepared):
    """One decode step. hidden_state: (1, 1, H); returns (1, max_len) f32."""
    h = hidden_state[0, 0:1, :]                            # (1, H)
    l_pad = e_t.shape[1]

    vmem_spec = pl.BlockSpec(memory_space=pltpu.MemorySpace.VMEM)

    if method == 'dot':
        kernel = functools.partial(_dot_kernel, max_len)
        inputs = (h, e_t)
    elif method == 'general':
        kernel = functools.partial(_general_kernel, max_len)
        inputs = (h, e_t, prepared['w'], prepared['b'])
    elif method == 'concat':
        kernel = functools.partial(_concat_kernel, max_len)
        inputs = (h, e_t, prepared['q_e'], prepared['q_h'], prepared['vb'])
    else:
        raise ValueError(method)

    # Explicit scoped-VMEM limit sized from the real footprint (with margin),
    # capped at 64 MiB so the same call compiles on v7x.
    in_bytes = sum(int(x.size) * x.dtype.itemsize for x in inputs)
    out_bytes = l_pad * 4
    vmem_limit = int(min(max(4 * (in_bytes + out_bytes) + (1 << 20), 16 << 20),
                         64 << 20))

    out_padded = pl.pallas_call(
        kernel,
        out_shape=jax.ShapeDtypeStruct((1, l_pad), jnp.float32),
        in_specs=[vmem_spec] * len(inputs),
        out_specs=vmem_spec,
        compiler_params=pltpu.CompilerParams(vmem_limit_bytes=vmem_limit),
    )(*inputs)
    return out_padded[:, :max_len]


def attn_forward(method, hidden_state, encoder_output, params):
    """Drop-in equivalent of Attn.forward (prepares everything, then one step)."""
    prepared = prepare_params(method, params)
    e_t, max_len = prepare_encoder(encoder_output)
    return attn_step(method, hidden_state, e_t, max_len, prepared)


# ----------------------------------------------------------------------------
# Pure-JAX reference (mirrors the PyTorch forward loop semantics)
# ----------------------------------------------------------------------------
def attn_reference(method, hidden_state, encoder_output, params):
    h = hidden_state[0, 0]          # (H,)
    e = encoder_output[0]           # (L, H)
    if method == 'dot':
        energies = e @ h
    elif method == 'general':
        attn_e = e @ params['w'].T + params['b']
        energies = attn_e @ h
    elif method == 'concat':
        hdim = h.shape[0]
        cat = jnp.concatenate(
            [jnp.broadcast_to(h, (e.shape[0], hdim)), e], axis=1)
        attn_e = cat @ params['w'].T + params['b']
        energies = attn_e @ params['v']
    return jax.nn.softmax(energies.reshape(1, -1), axis=1)


# ----------------------------------------------------------------------------
# Main
# ----------------------------------------------------------------------------
if __name__ == "__main__":
    hidden_size = 32
    max_len = 8

    key = jax.random.PRNGKey(0)
    k_h, k_e, k_wg, k_bg, k_wc, k_bc, k_v = jax.random.split(key, 7)

    hidden_state = jax.random.normal(k_h, (1, 1, hidden_size), jnp.float32)
    encoder_output = jax.random.normal(k_e, (1, max_len, hidden_size), jnp.float32)

    all_params = {
        'dot': {},
        'general': {
            'w': jax.random.normal(k_wg, (hidden_size, hidden_size), jnp.float32) * 0.1,
            'b': jax.random.normal(k_bg, (hidden_size,), jnp.float32) * 0.1,
        },
        'concat': {
            'w': jax.random.normal(k_wc, (hidden_size, 2 * hidden_size), jnp.float32) * 0.1,
            'b': jax.random.normal(k_bc, (hidden_size,), jnp.float32) * 0.1,
            'v': jax.random.normal(k_v, (hidden_size,), jnp.float32) * 0.1,
        },
    }

    # Encoder output is identical for every decode step: prepare it once.
    e_t, l_valid = prepare_encoder(encoder_output)

    ok = True
    for method in ('dot', 'general', 'concat'):
        prepared = prepare_params(method, all_params[method])   # once per model
        out = attn_step(method, hidden_state, e_t, l_valid, prepared)
        out = jax.block_until_ready(out)
        ref = attn_reference(method, hidden_state, encoder_output,
                             all_params[method])
        if out.shape != (1, max_len):
            ok = False
        if not jnp.allclose(out, ref, atol=1e-5, rtol=1e-5):
            ok = False
        if not jnp.allclose(jnp.sum(out), 1.0, atol=1e-5):
            ok = False

        # Convenience path (module-equivalent signature) must agree too.
        out2 = jax.block_until_ready(
            attn_forward(method, hidden_state, encoder_output, all_params[method]))
        if not jnp.allclose(out2, ref, atol=1e-5, rtol=1e-5):
            ok = False

    if ok:
        print("KERNEL_OK")
    else:
        print("KERNEL_MISMATCH")
</pallas_src>

<mosaic_0001>
module attributes {stable_mosaic.version = 11 : i64} {
  func.func @_dot_kernel(%arg0: memref<1x32xf32, #tpu.memory_space<vmem>>, %arg1: memref<32x128xf32, #tpu.memory_space<vmem>>, %arg2: memref<1x128xf32, #tpu.memory_space<vmem>>) attributes {dimension_semantics = [], scalar_prefetch = 0 : i64, scratch_operands = 0 : i64, tpu.core_type = #tpu.core_type<tc>} {
    %c0 = arith.constant 0 : index
    %c0_0 = arith.constant 0 : index
    %0 = vector.load %arg0[%c0, %c0_0] : memref<1x32xf32, #tpu.memory_space<vmem>>, vector<1x32xf32>
    %c0_1 = arith.constant 0 : index
    %c0_2 = arith.constant 0 : index
    %1 = vector.load %arg1[%c0_1, %c0_2] : memref<32x128xf32, #tpu.memory_space<vmem>>, vector<32x128xf32>
    %cst = arith.constant dense<0.000000e+00> : vector<1x128xf32>
    %2 = tpu.matmul %0, %1, %cst {dimension_numbers = #tpu.dot_dimension_numbers<[1], [0], [0], [1], [0, 0, 1, 1], [], []>} : vector<1x32xf32>, vector<32x128xf32>, vector<1x128xf32> -> vector<1x128xf32>
    %3 = tpu.iota {dimensions = array<i32: 1>} : vector<1x128xi32>
    %c8_i32 = arith.constant 8 : i32
    %4 = vector.broadcast %c8_i32 : i32 to vector<1x128xi32>
    %5 = arith.cmpi slt, %3, %4 : vector<1x128xi32>
    %cst_3 = arith.constant 0xFF800000 : f32
    %6 = vector.broadcast %cst_3 : f32 to vector<1x128xf32>
    %7 = arith.select %5, %2, %6 : vector<1x128xi1>, vector<1x128xf32>
    %cst_4 = arith.constant dense<0xFF800000> : vector<1xf32>
    %8 = vector.multi_reduction <maximumf>, %7, %cst_4 [1] : vector<1x128xf32> to vector<1xf32>
    %9 = vector.shape_cast %8 : vector<1xf32> to vector<1x1xf32>
    %10 = vector.broadcast %9 : vector<1x1xf32> to vector<1x128xf32>
    %11 = arith.subf %7, %10 : vector<1x128xf32>
    %12 = math.exp %11 : vector<1x128xf32>
    %cst_5 = arith.constant dense<0.000000e+00> : vector<1xf32>
    %13 = vector.multi_reduction <add>, %12, %cst_5 [1] : vector<1x128xf32> to vector<1xf32>
    %14 = vector.shape_cast %13 : vector<1xf32> to vector<1x1xf32>
    %15 = tpu.reciprocal %14 : vector<1x1xf32> -> vector<1x1xf32>
    %16 = vector.broadcast %15 : vector<1x1xf32> to vector<1x128xf32>
    %17 = arith.mulf %12, %16 : vector<1x128xf32>
    %c0_6 = arith.constant 0 : index
    %c0_7 = arith.constant 0 : index
    %18 = vector.load %arg2[%c0_6, %c0_7] : memref<1x128xf32, #tpu.memory_space<vmem>>, vector<1x128xf32>
    tpu.vector_store %arg2[%c0_6, %c0_7], %17 {strides = array<i32>} : memref<1x128xf32, #tpu.memory_space<vmem>>, vector<1x128xf32>,
    return
  }
}

</mosaic_0001>

<bundles_post_ra>
// kernel: tpu_custom_call.1
= control target key start
LH: loop header
LB: loop body
LE: loop exit
PB: predicated region body
PF: predicated region fallthrough
CT: control target
= control target key end

     0   :  { %7 = vsyncpa [#allocation3], 0  ;;  %s236_s0 = inlined_call_operand.hbm [shape: f32[1,32], index: 0, kind: input, shape index: {}]   ;;  %s237_s1 = inlined_call_operand.hbm [shape: f32[32,128], index: 1, kind: input, shape index: {}]   ;;  %s238_s2 = inlined_call_operand.hbm [shape: f32[1,128], index: 2, kind: output, shape index: {}]  }
   0x1   :  { %8 = vsyncpa [#allocation6], 0 }
   0x2   :  { %9 = vsyncpa [#allocation4], 0  ;;  %s15_s11 = sshll.u32 %s236_s0, 4  ;;  %s207_s12 = smov [#allocation2]   ;;  %s16_s11 = int_to_ptr.hbm [resolvable:$true] %s15_s11 }
   0x3   :  { %s17_s13 = sshll.u32 %s207_s12, 4  ;;  %s25_s16 = sshll.u32 %s237_s1, 4  ;;  %s18_s13 = int_to_ptr.vmem [resolvable:$true] %s17_s13  ;;  %s26_s16 = int_to_ptr.hbm [resolvable:$true] %s25_s16 }
   0x4   :  { %20 = dma.hbm_to_vmem [thread:$0]  %s16_s11, 16, %s18_s13, [#allocation3]  }
   0x5   :  { %s208_s17 = smov [#allocation5]   ;;  %s209_s19 = smov 128  }
   0x6   :  { %s27_s18 = sshll.u32 %s208_s17, 4  ;;  %s210_s20 = smov 8   ;;  %s28_s18 = int_to_ptr.vmem [resolvable:$true] %s27_s18 }
   0x7   :  { %33 = dma.hbm_to_vmem [thread:$0]  %s26_s16, 512, %s28_s18, [#allocation6], %s209_s19, %s209_s19, %s210_s20  }
   0x8   :  { %201 = dma.done.wait [#allocation3], 16  }
   0x9   :  { %202 = vsyncadd [#allocation3], 4294967280 }
   0xa   :  { %203 = dma.done.wait [#allocation6], 512  }
   0xb   :  { %204 = vsyncadd [#allocation6], 4294966784  ;;  %v46_v0 = vld [vmem:[#allocation5 + $0x18] sm:$0xff]  ;;  %v45_v1 = vld [vmem:[#allocation5 + $0x10] sm:$0xff]  ;;  %vm47_vm0 = vcmask 261120   ;;  %v71_v5 = vlaneseq  ;;  %vm75_vm2 = vcmask 1040384  }
   0xc   :  { %63 = vmatpush.msra.mxu0 %v46_v0  ;;  %v44_v2 = vld [vmem:[#allocation5 + $0x8] sm:$0xff]  ;;  %v43_v3 = vld [vmem:[#allocation5] sm:$0xff]  ;;  %v42_v4 = vld [vmem:[#allocation2] sm:$0x1]  ;;  %s211_s0 = smov [#allocation7]   ;;  %s108_s23 = sshll.u32 %s238_s2, 4  ;;  %s109_s23 = int_to_ptr.hbm [resolvable:$true] %s108_s23 }
   0xd   :  { %v72_v6 = vand.u32 127, %v71_v5  ;;  %s106_s1 = sshll.u32 %s211_s0, 4  ;;  %s107_s1 = int_to_ptr.vmem [resolvable:$true] %s106_s1 }
   0xe   :  { %64 = vmatpush.msra.mxu0 %v45_v1 }
   0xf   :  { %vm73_vm1 = vcmp.lt.s32.totalorder %v72_v6, 8 }
  0x10   :  { %65 = vmatpush.msra.mxu0 %v44_v2 }
  0x12   :  { %66 = vmatpush.msra.mxu0 %v43_v3 }
  0x13   :  { %119 = vmatmul.msk.f32.vlgmr.msra.gmra.mxu0 %vm47_vm0, %v42_v4 }
  0x90   :  { %v68_v7 = vpop.f32.mrf.mxu0 }
  0x91   :  { %v74_v8 = vsel %vm73_vm1, %v68_v7, -inf }
  0x92   :  { %v76_v9 = vsel %vm75_vm2, %v74_v8, -inf }
  0x93   :  { %77 = vmax.xlane.f32.xlu0 %v76_v9 }
 0x106   :  { %v78_v10 = vpop.xlane.xlu0 %77 }
 0x107   :  { %v79_v11 = vsub.f32 %v74_v8, %v78_v10 }
 0x109   :  { %v80_v12 = vmul.f32 1.442695, %v79_v11 }
 0x10b   :  { %125 = vpow2.f32 %v80_v12 }
 0x111   :  { %v126_v13 = vpop.eup %125 }
 0x112   :  { %v82_v14 = vsel %vm75_vm2, %v126_v13, 0.0 }
 0x113   :  { %83 = vadd.xlane.f32.xlu0 %v82_v14 }
 0x186   :  { %v84_v15 = vpop.xlane.xlu0 %83 }
 0x187   :  { %127 = vrcp.f32 %v84_v15  ;;  %v96_v19 = vand.u32 2147483648, %v84_v15  ;;  %v94_v21 = vand.u32 2147483647, %v84_v15  ;;  %vm90_vm4 = vweird.f32 %v84_v15 }
 0x189   :  { %v97_v23 = vor.u32 1.1754944e-38, %v96_v19  ;;  %vm95_vm6 = vcmp.eq.f32.partialorder %v94_v21, 8.507059e+37 }
 0x18d   :  { %v128_v16 = vpop.eup %127 }
 0x18e   :  { %v86_v17 = vmul.f32 %v128_v16, %v84_v15  ;;  %vm91_vm3 = vweird.f32 %v128_v16 }
 0x18f   :  { %vm92_vm5 = vmor %vm90_vm4, %vm91_vm3 }
 0x190   :  { %v87_v18 = vsub.f32 1.0, %v86_v17 }
 0x192   :  { %v88_v20 = vmul.f32 %v128_v16, %v87_v18 }
 0x194   :  { %v89_v22 = vadd.f32 %v128_v16, %v88_v20 }
 0x196   :  { %v93_v24 = vsel %vm92_vm5, %v128_v16, %v89_v22 }
 0x197   :  { %v98_v25 = vsel %vm95_vm6, %v97_v23, %v93_v24 }
 0x198   :  { %v99_v26 = vmul.f32 %v126_v13, %v98_v25 }
 0x19a   :  { %100 = vst [vmem:[#allocation7] sm:$0x1] %v99_v26 }
 0x19b   :  { %111 = dma.vmem_to_hbm [thread:$0]  %s107_s1, 16, %s109_s23, [#allocation4]  }
 0x19c   :  { %205 = dma.done.wait [#allocation4], 16  }
 0x19d   :  { %206 = vsyncadd [#allocation4], 4294967280 }
 0x19e   :  { %116 = vsyncpa [#allocation3], 1 }
 0x19f   :  { %117 = vsyncpa [#allocation6], 1 }
 0x1a0   :  { %118 = vsyncpa [#allocation4], 1 }

</bundles_post_ra>
